<compile_context>
chip_gen: v6e
topology: v6e:2x2x1
jax: 0.10.0
libtpu: 0.0.40
codegen_flags: <defaults>
</compile_context>

<pallas_src>
import functools

import jax
import jax.numpy as jnp
from jax.experimental import pallas as pl
from jax.experimental.pallas import tpu as pltpu


def _dice_bce_sums_kernel(x_ref, t_ref, o_ref,
                          bce_acc, int_acc, st_acc,
                          *, hw, tile, needs_mask):
    """Per-(sample, split), per-class partial sums over lane (H*W tile) axis.

    Grid = (N, P, K).  Axes 0/1 ("parallel"): batch sample and HW split
    (megacore).  Axis 2 ("arbitrary") reduces over flattened spatial tiles.
    Output per (sample, split) is (C, 3):
      [sum BCE-with-logits, sum sigmoid*t, sum (sigmoid + t)].
    """
    k = pl.program_id(2)

    @pl.when(k == 0)
    def _init():
        bce_acc[...] = jnp.zeros_like(bce_acc)
        int_acc[...] = jnp.zeros_like(int_acc)
        st_acc[...] = jnp.zeros_like(st_acc)

    x = x_ref[0].astype(jnp.float32)     # (C, tile)
    t = t_ref[0].astype(jnp.float32)     # (C, tile)

    # Shared transcendentals: one exp, one reciprocal, one log1p per element.
    e = jnp.exp(-jnp.abs(x))             # exp(-|x|)
    d = 1.0 / (1.0 + e)                  # exact reciprocal (keeps 1e-5 parity)
    s = jnp.where(x >= 0.0, d, e * d)    # sigmoid(x)
    # Numerically stable BCE-with-logits (== torch.nn.BCEWithLogitsLoss):
    bce = jnp.maximum(x, 0.0) - x * t + jnp.log1p(e)
    inter = s * t
    st = s + t

    if needs_mask:
        # Global tile index (unclamped); lanes past HW contribute exactly 0.
        g = pl.program_id(1) * pl.num_programs(2) + k
        remaining = hw - g * tile
        lane = jax.lax.broadcasted_iota(jnp.int32, x.shape, 1)
        valid = lane < remaining
        bce = jnp.where(valid, bce, 0.0)
        inter = jnp.where(valid, inter, 0.0)
        st = jnp.where(valid, st, 0.0)

    # Pure-VPU elementwise accumulation; no per-step cross-lane reductions.
    bce_acc[...] += bce
    int_acc[...] += inter
    st_acc[...] += st

    @pl.when(k == pl.num_programs(2) - 1)
    def _finalize():
        o_ref[0, 0] = jnp.concatenate(
            [
                jnp.sum(bce_acc[...], axis=1, keepdims=True),
                jnp.sum(int_acc[...], axis=1, keepdims=True),
                jnp.sum(st_acc[...], axis=1, keepdims=True),
            ],
            axis=1,
        )


def _pick_tile(hw, target):
    """Lane tile: full extent when small enough, else a fixed 128-multiple
    tile; the tail is handled by the in-kernel lane mask (VMEM stays bounded
    even for non-128-divisible HW, e.g. 1000x1000)."""
    if hw <= target:
        return hw
    return target  # `target` must be a multiple of 128


def _per_class_sums(x3, t3, tile_target):
    """x3, t3: (N, C, HW).  Returns (N, P, C, 3) float32 partial sums."""
    N, C, HW = x3.shape
    tile = _pick_tile(HW, tile_target)
    num_tiles = (HW + tile - 1) // tile          # cdiv
    P = 2 if num_tiles >= 2 else 1               # 2-way split for v7x megacore
    tps = (num_tiles + P - 1) // P               # tiles per split
    needs_clamp = P * tps > num_tiles            # odd tile count -> one pad step
    needs_mask = P * tps * tile != HW            # any padded lanes at all

    if needs_clamp:
        def in_map(n, p, k):
            return (n, 0, jnp.minimum(p * tps + k, num_tiles - 1))
    else:
        def in_map(n, p, k):
            return (n, 0, p * tps + k)

    def out_map(n, p, k):
        return (n, p, 0, 0)

    kernel = functools.partial(
        _dice_bce_sums_kernel, hw=HW, tile=tile, needs_mask=needs_mask)

    elems = N * C * HW
    cost = pl.CostEstimate(
        flops=12 * elems,
        transcendentals=2 * elems,
        bytes_accessed=(x3.size * x3.dtype.itemsize
                        + t3.size * t3.dtype.itemsize
                        + N * P * C * 3 * 4),
    )

    # Double-buffered inputs (2 x 2) + 3 accumulators, sublane-padded C.
    cpad = ((C + 7) // 8) * 8
    vmem_need = (2 * 2 + 3) * cpad * tile * 4
    vmem_limit = max(32 * 1024 * 1024, min(2 * vmem_need, 96 * 1024 * 1024))

    return pl.pallas_call(
        kernel,
        out_shape=jax.ShapeDtypeStruct((N, P, C, 3), jnp.float32),
        grid_spec=pltpu.PrefetchScalarGridSpec(
            num_scalar_prefetch=0,
            grid=(N, P, tps),
            in_specs=[
                pl.BlockSpec((1, C, tile), in_map),
                pl.BlockSpec((1, C, tile), in_map),
            ],
            out_specs=pl.BlockSpec((1, 1, C, 3), out_map),
            scratch_shapes=[pltpu.VMEM((C, tile), jnp.float32)] * 3,
        ),
        compiler_params=pltpu.CompilerParams(
            dimension_semantics=("parallel", "parallel", "arbitrary"),
            vmem_limit_bytes=vmem_limit,
        ),
        cost_estimate=cost,
    )(x3, t3)


@functools.partial(jax.jit, static_argnames=("smooth", "tile_target"))
def dice_bce_loss(output, target, weight, smooth=1.0, tile_target=32768):
    """DiceBCE forward. output/target: (N, C, H, W); weight: (C,).

    `target` (and `output`, if tolerated) may be passed in a narrower dtype
    (bf16/int8 for 0/1 targets); the kernel casts to f32 internally, so the
    narrow dtype is a free HBM-traffic saving when produced upstream.
    """
    N, C, H, W = output.shape
    L = N * H * W

    # Contiguous reshape only — no HBM-level NCHW transpose.
    x3 = output.reshape(N, C, H * W)
    t3 = target.reshape(N, C, H * W)

    sums = jnp.sum(_per_class_sums(x3, t3, tile_target), axis=(0, 1))  # (C, 3)
    bce_sum = sums[:, 0]
    inter_sum = sums[:, 1]
    st_sum = sums[:, 2]          # sum(sigmoid) + sum(target), merged in-kernel

    # BCEWeighted: per-class mean of BCE-with-logits, weighted, then mean.
    bce_per_class = bce_sum / jnp.float32(L)
    bce_loss = jnp.mean(bce_per_class * weight)

    # DiceLoss
    dice = (2.0 * inter_sum + smooth) / (st_sum + smooth)
    dice_loss = jnp.mean((1.0 - dice) * weight)

    return dice_loss + bce_loss


def _reference_jax(output, target, weight, smooth=1.0):
    """Pure-JAX reference replicating the PyTorch module exactly."""
    C = output.shape[1]
    x = output.astype(jnp.float32)
    t = target.astype(jnp.float32)
    # BCEWeighted
    bce = jnp.maximum(x, 0.0) - x * t + jnp.log1p(jnp.exp(-jnp.abs(x)))
    bce = jnp.transpose(bce, (1, 0, 2, 3)).reshape(C, -1).mean(axis=1)
    bce_loss = jnp.mean(bce * weight)
    # DiceLoss
    s = jax.nn.sigmoid(x)
    inter = jnp.transpose(s * t, (1, 0, 2, 3)).reshape(C, -1).sum(axis=1)
    s_sum = jnp.sum(s, axis=(0, 2, 3))
    t_sum = jnp.sum(t, axis=(0, 2, 3))
    dice = (2.0 * inter + smooth) / (s_sum + t_sum + smooth)
    dice_loss = jnp.mean((1.0 - dice) * weight)
    return dice_loss + bce_loss


if __name__ == "__main__":
    num_classes = 11
    # Deterministic module "parameter": default weight = [1]*11
    weight = jnp.ones((num_classes,), dtype=jnp.float32)

    key = jax.random.PRNGKey(0)
    k1, k2, k3, k4 = jax.random.split(key, 4)

    # Case 1: small shape, HW fits one full-extent lane block (no masking).
    N, H, W = 2, 16, 16
    logits = jax.random.normal(k1, (N, num_classes, H, W), dtype=jnp.float32)
    targets = (jax.random.uniform(k2, (N, num_classes, H, W)) > 0.5).astype(
        jnp.float32
    )
    loss = jax.block_until_ready(dice_bce_loss(logits, targets, weight))
    ref = jax.block_until_ready(_reference_jax(logits, targets, weight))
    assert jnp.allclose(loss, ref, rtol=1e-5, atol=1e-5), (loss, ref)

    # Case 2: exercise the cdiv grid, tail lane-mask, clamped index_map and the
    # 2-way parallel HW split (v7x megacore) on a tiny non-128-divisible shape.
    N2, H2, W2 = 1, 18, 18   # HW = 324, tile_target=128 -> 3 tiles, P = 2
    logits2 = jax.random.normal(k3, (N2, num_classes, H2, W2),
                                dtype=jnp.float32)
    targets2 = (jax.random.uniform(k4, (N2, num_classes, H2, W2)) > 0.5).astype(
        jnp.float32
    )
    loss2 = jax.block_until_ready(
        dice_bce_loss(logits2, targets2, weight, tile_target=128))
    ref2 = jax.block_until_ready(_reference_jax(logits2, targets2, weight))
    assert jnp.allclose(loss2, ref2, rtol=1e-5, atol=1e-5), (loss2, ref2)

    print("KERNEL_OK")
</pallas_src>

<mosaic_0001>
module attributes {stable_mosaic.version = 11 : i64} {
  func.func @_dice_bce_sums_kernel(%arg0: i32, %arg1: i32, %arg2: i32, %arg3: memref<1x11x256xf32, #tpu.memory_space<vmem>>, %arg4: memref<1x11x256xf32, #tpu.memory_space<vmem>>, %arg5: memref<1x1x11x3xf32, #tpu.memory_space<vmem>>, %arg6: memref<11x256xf32, #tpu.memory_space<vmem>>, %arg7: memref<11x256xf32, #tpu.memory_space<vmem>>, %arg8: memref<11x256xf32, #tpu.memory_space<vmem>>) attributes {dimension_semantics = [#tpu.dimension_semantics<parallel>, #tpu.dimension_semantics<parallel>, #tpu.dimension_semantics<arbitrary>], iteration_bounds = array<i64: 2, 1, 1>, scalar_prefetch = 0 : i64, scratch_operands = 3 : i64, tpu.core_type = #tpu.core_type<tc>, window_params = [{transform_indices = @transform_0, window_bounds = array<i64: 1, 11, 256>}, {transform_indices = @transform_1, window_bounds = array<i64: 1, 11, 256>}, {transform_indices = @transform_2, window_bounds = array<i64: 1, 1, 11, 3>}]} {
    %c0_i32 = arith.constant 0 : i32
    %0 = arith.cmpi eq, %arg2, %c0_i32 : i32
    %1 = arith.extui %0 : i1 to i32
    %c0_i32_0 = arith.constant 0 : i32
    %2 = arith.cmpi ne, %1, %c0_i32_0 : i32
    scf.if %2 {
      %cst_24 = arith.constant 0.000000e+00 : f32
      %39 = vector.broadcast %cst_24 : f32 to vector<11x256xf32>
      %c0_25 = arith.constant 0 : index
      %c0_26 = arith.constant 0 : index
      %40 = vector.load %arg6[%c0_25, %c0_26] : memref<11x256xf32, #tpu.memory_space<vmem>>, vector<11x256xf32>
      tpu.vector_store %arg6[%c0_25, %c0_26], %39 {strides = array<i32>} : memref<11x256xf32, #tpu.memory_space<vmem>>, vector<11x256xf32>,
      %cst_27 = arith.constant 0.000000e+00 : f32
      %41 = vector.broadcast %cst_27 : f32 to vector<11x256xf32>
      %c0_28 = arith.constant 0 : index
      %c0_29 = arith.constant 0 : index
      %42 = vector.load %arg7[%c0_28, %c0_29] : memref<11x256xf32, #tpu.memory_space<vmem>>, vector<11x256xf32>
      tpu.vector_store %arg7[%c0_28, %c0_29], %41 {strides = array<i32>} : memref<11x256xf32, #tpu.memory_space<vmem>>, vector<11x256xf32>,
      %cst_30 = arith.constant 0.000000e+00 : f32
      %43 = vector.broadcast %cst_30 : f32 to vector<11x256xf32>
      %c0_31 = arith.constant 0 : index
      %c0_32 = arith.constant 0 : index
      %44 = vector.load %arg8[%c0_31, %c0_32] : memref<11x256xf32, #tpu.memory_space<vmem>>, vector<11x256xf32>
      tpu.vector_store %arg8[%c0_31, %c0_32], %43 {strides = array<i32>} : memref<11x256xf32, #tpu.memory_space<vmem>>, vector<11x256xf32>,
    } else {
    }
    %c0 = arith.constant 0 : index
    %c0_1 = arith.constant 0 : index
    %c0_2 = arith.constant 0 : index
    %3 = vector.load %arg3[%c0, %c0_1, %c0_2] : memref<1x11x256xf32, #tpu.memory_space<vmem>>, vector<1x11x256xf32>
    %4 = vector.shape_cast %3 : vector<1x11x256xf32> to vector<11x256xf32>
    %c0_3 = arith.constant 0 : index
    %c0_4 = arith.constant 0 : index
    %c0_5 = arith.constant 0 : index
    %5 = vector.load %arg4[%c0_3, %c0_4, %c0_5] : memref<1x11x256xf32, #tpu.memory_space<vmem>>, vector<1x11x256xf32>
    %6 = vector.shape_cast %5 : vector<1x11x256xf32> to vector<11x256xf32>
    %7 = math.absf %4 : vector<11x256xf32>
    %cst = arith.constant 0.000000e+00 : f32
    %8 = vector.broadcast %cst : f32 to vector<11x256xf32>
    %9 = arith.subf %8, %7 : vector<11x256xf32>
    %10 = math.exp %9 : vector<11x256xf32>
    %cst_6 = arith.constant 1.000000e+00 : f32
    %11 = vector.broadcast %cst_6 : f32 to vector<11x256xf32>
    %12 = arith.addf %11, %10 : vector<11x256xf32>
    %cst_7 = arith.constant 1.000000e+00 : f32
    %13 = vector.broadcast %cst_7 : f32 to vector<11x256xf32>
    %14 = arith.divf %13, %12 : vector<11x256xf32>
    %cst_8 = arith.constant 0.000000e+00 : f32
    %15 = vector.broadcast %cst_8 : f32 to vector<11x256xf32>
    %16 = arith.cmpf oge, %4, %15 : vector<11x256xf32>
    %17 = arith.mulf %10, %14 : vector<11x256xf32>
    %18 = arith.select %16, %14, %17 : vector<11x256xi1>, vector<11x256xf32>
    %cst_9 = arith.constant 0.000000e+00 : f32
    %19 = vector.broadcast %cst_9 : f32 to vector<11x256xf32>
    %20 = arith.maximumf %4, %19 : vector<11x256xf32>
    %21 = arith.mulf %4, %6 : vector<11x256xf32>
    %22 = arith.subf %20, %21 : vector<11x256xf32>
    %23 = math.log1p %10 : vector<11x256xf32>
    %24 = arith.addf %22, %23 : vector<11x256xf32>
    %25 = arith.mulf %18, %6 : vector<11x256xf32>
    %26 = arith.addf %18, %6 : vector<11x256xf32>
    %c0_10 = arith.constant 0 : index
    %c0_11 = arith.constant 0 : index
    %27 = vector.load %arg6[%c0_10, %c0_11] : memref<11x256xf32, #tpu.memory_space<vmem>>, vector<11x256xf32>
    %28 = arith.addf %27, %24 : vector<11x256xf32>
    %c0_12 = arith.constant 0 : index
    %c0_13 = arith.constant 0 : index
    %29 = vector.load %arg6[%c0_12, %c0_13] : memref<11x256xf32, #tpu.memory_space<vmem>>, vector<11x256xf32>
    tpu.vector_store %arg6[%c0_12, %c0_13], %28 {strides = array<i32>} : memref<11x256xf32, #tpu.memory_space<vmem>>, vector<11x256xf32>,
    %c0_14 = arith.constant 0 : index
    %c0_15 = arith.constant 0 : index
    %30 = vector.load %arg7[%c0_14, %c0_15] : memref<11x256xf32, #tpu.memory_space<vmem>>, vector<11x256xf32>
    %31 = arith.addf %30, %25 : vector<11x256xf32>
    %c0_16 = arith.constant 0 : index
    %c0_17 = arith.constant 0 : index
    %32 = vector.load %arg7[%c0_16, %c0_17] : memref<11x256xf32, #tpu.memory_space<vmem>>, vector<11x256xf32>
    tpu.vector_store %arg7[%c0_16, %c0_17], %31 {strides = array<i32>} : memref<11x256xf32, #tpu.memory_space<vmem>>, vector<11x256xf32>,
    %c0_18 = arith.constant 0 : index
    %c0_19 = arith.constant 0 : index
    %33 = vector.load %arg8[%c0_18, %c0_19] : memref<11x256xf32, #tpu.memory_space<vmem>>, vector<11x256xf32>
    %34 = arith.addf %33, %26 : vector<11x256xf32>
    %c0_20 = arith.constant 0 : index
    %c0_21 = arith.constant 0 : index
    %35 = vector.load %arg8[%c0_20, %c0_21] : memref<11x256xf32, #tpu.memory_space<vmem>>, vector<11x256xf32>
    tpu.vector_store %arg8[%c0_20, %c0_21], %34 {strides = array<i32>} : memref<11x256xf32, #tpu.memory_space<vmem>>, vector<11x256xf32>,
    %c0_i32_22 = arith.constant 0 : i32
    %36 = arith.cmpi eq, %arg2, %c0_i32_22 : i32
    %37 = arith.extui %36 : i1 to i32
    %c0_i32_23 = arith.constant 0 : i32
    %38 = arith.cmpi ne, %37, %c0_i32_23 : i32
    scf.if %38 {
      %c0_24 = arith.constant 0 : index
      %c0_25 = arith.constant 0 : index
      %39 = vector.load %arg6[%c0_24, %c0_25] : memref<11x256xf32, #tpu.memory_space<vmem>>, vector<11x256xf32>
      %cst_26 = arith.constant dense<0.000000e+00> : vector<11xf32>
      %40 = vector.multi_reduction <add>, %39, %cst_26 [1] : vector<11x256xf32> to vector<11xf32>
      %41 = vector.shape_cast %40 : vector<11xf32> to vector<11x1xf32>
      %c0_27 = arith.constant 0 : index
      %c0_28 = arith.constant 0 : index
      %42 = vector.load %arg7[%c0_27, %c0_28] : memref<11x256xf32, #tpu.memory_space<vmem>>, vector<11x256xf32>
      %cst_29 = arith.constant dense<0.000000e+00> : vector<11xf32>
      %43 = vector.multi_reduction <add>, %42, %cst_29 [1] : vector<11x256xf32> to vector<11xf32>
      %44 = vector.shape_cast %43 : vector<11xf32> to vector<11x1xf32>
      %c0_30 = arith.constant 0 : index
      %c0_31 = arith.constant 0 : index
      %45 = vector.load %arg8[%c0_30, %c0_31] : memref<11x256xf32, #tpu.memory_space<vmem>>, vector<11x256xf32>
      %cst_32 = arith.constant dense<0.000000e+00> : vector<11xf32>
      %46 = vector.multi_reduction <add>, %45, %cst_32 [1] : vector<11x256xf32> to vector<11xf32>
      %47 = vector.shape_cast %46 : vector<11xf32> to vector<11x1xf32>
      %48 = tpu.concatenate %41, %44, %47 in 1 : vector<11x1xf32>, vector<11x1xf32>, vector<11x1xf32> -> vector<11x3xf32>
      %c0_33 = arith.constant 0 : index
      %c0_34 = arith.constant 0 : index
      %c0_35 = arith.constant 0 : index
      %c0_36 = arith.constant 0 : index
      %49 = vector.load %arg5[%c0_33, %c0_34, %c0_35, %c0_36] : memref<1x1x11x3xf32, #tpu.memory_space<vmem>>, vector<1x1x11x3xf32>
      %50 = vector.shape_cast %49 : vector<1x1x11x3xf32> to vector<11x3xf32>
      %51 = vector.shape_cast %48 : vector<11x3xf32> to vector<1x1x11x3xf32>
      tpu.vector_store %arg5[%c0_33, %c0_34, %c0_35, %c0_36], %51 {strides = array<i32>} : memref<1x1x11x3xf32, #tpu.memory_space<vmem>>, vector<1x1x11x3xf32>,
    } else {
    }
    return
  }
  func.func @transform_0(%arg0: i32, %arg1: i32, %arg2: i32) -> (i32, i32, i32) {
    %c1_i32 = arith.constant 1 : i32
    %0 = arith.muli %arg1, %c1_i32 : i32
    %1 = arith.addi %0, %arg2 : i32
    %c0_i32 = arith.constant 0 : i32
    %c0_i32_0 = arith.constant 0 : i32
    return %arg0, %c0_i32, %1 : i32, i32, i32
  }
  func.func @transform_1(%arg0: i32, %arg1: i32, %arg2: i32) -> (i32, i32, i32) {
    %c1_i32 = arith.constant 1 : i32
    %0 = arith.muli %arg1, %c1_i32 : i32
    %1 = arith.addi %0, %arg2 : i32
    %c0_i32 = arith.constant 0 : i32
    %c0_i32_0 = arith.constant 0 : i32
    return %arg0, %c0_i32, %1 : i32, i32, i32
  }
  func.func @transform_2(%arg0: i32, %arg1: i32, %arg2: i32) -> (i32, i32, i32, i32) {
    %c0_i32 = arith.constant 0 : i32
    %c0_i32_0 = arith.constant 0 : i32
    %c0_i32_1 = arith.constant 0 : i32
    return %arg0, %arg1, %c0_i32, %c0_i32_0 : i32, i32, i32, i32
  }
}

</mosaic_0001>

<bundles_post_ra>
// kernel: dice_bce_loss.1
= control target key start
LH: loop header
LB: loop body
LE: loop exit
PB: predicated region body
PF: predicated region fallthrough
CT: control target
= control target key end

     0   :  { %s664_s9 = smov 0   ;;  %s666_s10 = smov 0   ;;  %s800_s0 = inlined_call_operand.vmem [shape: f32[2,11,256], index: 0, kind: input, shape index: {}]   ;;  %s801_s1 = inlined_call_operand.vmem [shape: f32[2,11,256], index: 1, kind: input, shape index: {}]   ;;  %s802_s2 = inlined_call_operand.vmem [shape: f32[2,1,11,3], index: 2, kind: output, shape index: {}]  }
   0x1   :  { %s668_s11 = smov 0  }
   0x2 LB: > { %s31_s12 = sadd.s32 1, %s642_s10  ;;  %p563_p0 = scmp.ge.s32.totalorder %s646_s11, 1  ;;  %s646_s11 = sphi %s668_s11, %s12_s11   ;;  %s642_s10 = sphi %s666_s10, %s812_s10   ;;  %s638_s9 = sphi %s664_s9, %s811_s9  }
   0x3   : > { %p33_p1 = scmp.ge.s32.totalorder %s31_s12, 2  ;;  %p165_p2 = scmp.lt.s32.totalorder %s646_s11, 3 }
   0x5   : > { %s814_s12 = smov (%p33_p1, %s31_s12), 0  ;;  %p166_p3 = pnand %p563_p0, %p165_p2 }
   0x6   : > { %p208_p4 = scmp.lt.s32.totalorder (!%p166_p3), %s638_s9, 1 }
   0x7   : > { %169 = sbr.rel (%p166_p3) target bundleno = 221 (0xdd), region = 28 }
   0xc   : > { %v648_v0 = vmov 0.0   ;;  %s816_s9 = smov (!%p208_p4, %s638_s9), 1  ;;  %vm409_vm8 = vcmask 1042432   ;;  %vm442_vm9 = vcmask 15360   ;;  %vm439_vm10 = vcmask 7168  }
   0xd   : > { %245 = vst [vmem:[#allocation2 + $0x18] sm:$0x7] %v648_v0  ;;  %246 = vst [vmem:[#allocation2 + $0x8] sm:$0x7] %v648_v0  ;;  %s572_s13 = sshll.u32 %s816_s9, 5  ;;  %s574_s20 = sshll.u32 %s816_s9, 4 }
   0xe   : > { %249 = vst [vmem:[#allocation3 + $0x8] sm:$0x7] %v648_v0  ;;  %250 = vst [vmem:[#allocation3 + $0x10] sm:$0x7] %v648_v0  ;;  %s215_s16 = scalar_lea.vmem %s800_s0, %s572_s13  ;;  %s227_s19 = scalar_lea.vmem %s801_s1, %s572_s13  ;;  %vm447_vm11 = vcmask 18432   ;;  %vm445_vm12 = vcmask 23552  }
   0xf   : > { %253 = vst [vmem:[#allocation4 + $0x10] sm:$0x7] %v648_v0  ;;  %254 = vst [vmem:[#allocation4 + $0x18] sm:$0x7] %v648_v0  ;;  %v690_v1 = vld [vmem:[%s215_s16] sm:$0xff]  ;;  %v692_v2 = vld [vmem:[%s215_s16 + $0x8] sm:$0xff]  ;;  %s238_s23 = scalar_lea.vmem %s802_s2, %s574_s20 }
  0x10   : > { %v263_v3 = vand.u32 2147483647, %v690_v1  ;;  %v264_v4 = vand.u32 2147483647, %v692_v2  ;;  %v696_v5 = vld [vmem:[%s215_s16 + $0x10] sm:$0x7] }
  0x11   : > { %v698_v8 = vld [vmem:[%s215_s16 + $0x18] sm:$0x7]  ;;  %v265_v9 = vand.u32 2147483647, %v696_v5  ;;  %v716_v25 = vld [vmem:[%s227_s19] sm:$0xff]  ;;  %v260_v27 = vld [vmem:[%s227_s19 + $0x8] sm:$0xff] }
  0x12   : > { %v267_v6 = vsub.f32 0.0, %v263_v3  ;;  %v268_v7 = vsub.f32 0.0, %v264_v4  ;;  %v266_v10 = vand.u32 2147483647, %v698_v8  ;;  %v719_v29 = vld [vmem:[%s227_s19 + $0x10] sm:$0x7]  ;;  %v307_v31 = vmul.f32 %v716_v25, %v690_v1 }
  0x13   : > { %v269_v13 = vsub.f32 0.0, %v265_v9  ;;  %v303_v30 = vmax.f32 %v690_v1, 0.0  ;;  %v304_v32 = vmax.f32 %v692_v2, 0.0  ;;  %v308_v33 = vmul.f32 %v260_v27, %v692_v2  ;;  %v726_v35 = vld [vmem:[%s227_s19 + $0x18] sm:$0x7] }
  0x14   : > { %v271_v11 = vmul.f32 1.442695, %v267_v6  ;;  %v273_v12 = vmul.f32 1.442695, %v268_v7  ;;  %v270_v14 = vsub.f32 0.0, %v266_v10  ;;  %v305_v38 = vmax.f32 %v696_v5, 0.0 }
  0x15   : > { %v275_v15 = vmul.f32 1.442695, %v269_v13  ;;  %v309_v39 = vmul.f32 %v719_v29, %v696_v5  ;;  %vm291_vm0 = vcmp.ge.f32.partialorder %v690_v1, 0.0  ;;  %vm292_vm1 = vcmp.ge.f32.partialorder %v692_v2, 0.0 }
  0x16   : > { %600 = vpow2.f32 %v271_v11  ;;  %v277_v16 = vmul.f32 1.442695, %v270_v14  ;;  %v306_v43 = vmax.f32 %v698_v8, 0.0  ;;  %v310_v44 = vmul.f32 %v726_v35, %v698_v8 }
  0x17   : > { %602 = vpow2.f32 %v273_v12  ;;  %v311_v46 = vsub.f32 %v303_v30, %v307_v31  ;;  %v312_v51 = vsub.f32 %v304_v32, %v308_v33  ;;  %v313_v53 = vsub.f32 %v305_v38, %v309_v39  ;;  %v377_v30 = vld [vmem:[#allocation3 + $0x8] sm:$0x7]  ;;  %v378_v32 = vld [vmem:[#allocation3 + $0x10] sm:$0x7]  ;;  %v365_v33 = vld [vmem:[#allocation2 + $0x18] sm:$0x7] }
  0x18   : > { %604 = vpow2.f32 %v275_v15  ;;  %vm293_vm3 = vcmp.ge.f32.partialorder %v696_v5, 0.0  ;;  %vm294_vm4 = vcmp.ge.f32.partialorder %v698_v8, 0.0  ;;  %v314_v61 = vsub.f32 %v306_v43, %v310_v44  ;;  %v366_v38 = vld [vmem:[#allocation2 + $0x8] sm:$0x7]  ;;  %v390_v43 = vld [vmem:[#allocation4 + $0x18] sm:$0x7] }
  0x19   : > { %606 = vpow2.f32 %v277_v16 }
  0x23   : > { %v702_v17 = vpop.eup %600 }
  0x24   : > { %v603_v18 = vpop.eup %602  ;;  %v279_v19 = vadd.f32 1.0, %v702_v17  ;;  %v318_v26 = vmul.f32 -0.5, %v702_v17  ;;  %v321_v37 = vand.u32 2147483647, %v702_v17 }
  0x25   : > { %v280_v20 = vadd.f32 1.0, %v603_v18  ;;  %v705_v21 = vpop.eup %604  ;;  %v327_v28 = vmul.f32 -0.5, %v603_v18  ;;  %v330_v42 = vand.u32 2147483647, %v603_v18 }
  0x26   : > { %608 = vlog2.f32 %v279_v19  ;;  %v707_v22 = vpop.eup %606  ;;  %v281_v23 = vadd.f32 1.0, %v705_v21  ;;  %v319_v34 = vadd.f32 1.0, %v318_v26  ;;  %v336_v36 = vmul.f32 -0.5, %v705_v21 }
  0x27   : > { %610 = vrcp.f32 %v280_v20  ;;  %v282_v24 = vadd.f32 1.0, %v707_v22  ;;  %v345_v40 = vmul.f32 -0.5, %v707_v22  ;;  %v328_v41 = vadd.f32 1.0, %v327_v28 }
  0x28   : > { %612 = vlog2.f32 %v280_v20  ;;  %v339_v45 = vand.u32 2147483647, %v705_v21  ;;  %v320_v47 = vmul.f32 %v702_v17, %v319_v34  ;;  %v337_v48 = vadd.f32 1.0, %v336_v36 }
  0x29   : > { %614 = vrcp.f32 %v279_v19  ;;  %v348_v49 = vand.u32 2147483647, %v707_v22  ;;  %vm742_vm2 = vcmp.lt.f32.partialorder %v321_v37, 0.0004427343  ;;  %v346_v54 = vadd.f32 1.0, %v345_v40 }
  0x2a   : > { %616 = vrcp.f32 %v281_v23  ;;  %v329_v57 = vmul.f32 %v603_v18, %v328_v41  ;;  %vm748_vm5 = vcmp.lt.f32.partialorder %v330_v42, 0.0004427343  ;;  %vm752_vm6 = vcmp.lt.f32.partialorder %v339_v45, 0.0004427343  ;;  %v389_v42 = vld [vmem:[#allocation4 + $0x10] sm:$0x7] }
  0x2b   : > { %618 = vrcp.f32 %v282_v24  ;;  %v338_v4 = vmul.f32 %v705_v21, %v337_v48  ;;  %vm759_vm7 = vcmp.lt.f32.partialorder %v348_v49, 0.0004427343  ;;  %v347_v12 = vmul.f32 %v707_v22, %v346_v54 }
  0x2c   : > { %620 = vlog2.f32 %v281_v23 }
  0x2d   : > { %622 = vlog2.f32 %v282_v24 }
  0x33   : > { %v609_v50 = vpop.eup %608 }
  0x34   : > { %v611_v55 = vpop.eup %610  ;;  %v317_v56 = vmul.f32 0.6931472, %v609_v50 }
  0x35   : > { %v613_v58 = vpop.eup %612  ;;  %v296_v60 = vmul.f32 %v611_v55, %v603_v18 }
  0x36   : > { %v615_v63 = vpop.eup %614  ;;  %v323_v0 = vsel %vm742_vm2, %v320_v47, %v317_v56  ;;  %v326_v3 = vmul.f32 0.6931472, %v613_v58 }
  0x37   : > { %v617_v7 = vpop.eup %616  ;;  %v351_v9 = vadd.f32 %v323_v0, %v311_v46  ;;  %v295_v10 = vmul.f32 %v615_v63, %v702_v17  ;;  %v300_v11 = vsel %vm292_vm1, %v611_v55, %v296_v60 }
  0x38   : > { %v619_v13 = vpop.eup %618  ;;  %v332_v14 = vsel %vm748_vm5, %v329_v57, %v326_v3  ;;  %v356_v15 = vmul.f32 %v300_v11, %v260_v27  ;;  %v297_v16 = vmul.f32 %v617_v7, %v705_v21  ;;  %v360_v18 = vadd.f32 %v300_v11, %v260_v27 }
  0x39   : > { %v621_v19 = vpop.eup %620  ;;  %v352_v20 = vadd.f32 %v332_v14, %v312_v51  ;;  %v299_v23 = vsel %vm291_vm0, %v615_v63, %v295_v10  ;;  %v298_v17 = vmul.f32 %v619_v13, %v707_v22 }
  0x3a   : > { %v623_v24 = vpop.eup %622  ;;  %v355_v2 = vmul.f32 %v299_v23, %v716_v25  ;;  %v335_v26 = vmul.f32 0.6931472, %v621_v19  ;;  %v301_v28 = vsel %vm293_vm3, %v617_v7, %v297_v16  ;;  %v359_v34 = vadd.f32 %v299_v23, %v716_v25 }
  0x3b   : > { %v344_v31 = vmul.f32 0.6931472, %v623_v24  ;;  %v302_v21 = vsel %vm294_vm4, %v619_v13, %v298_v17  ;;  %v357_v27 = vmul.f32 %v301_v28, %v719_v29  ;;  %v406_v36 = vadd.f32 %v352_v20, %v351_v9 }
  0x3c   : > { %v341_v1 = vsel %vm752_vm6, %v338_v4, %v335_v26  ;;  %v358_v22 = vmul.f32 %v302_v21, %v726_v35  ;;  %v419_v8 = vadd.f32 %v356_v15, %v355_v2  ;;  %v361_v45 = vadd.f32 %v301_v28, %v719_v29 }
  0x3d   : > { %v350_v5 = vsel %vm759_vm7, %v347_v12, %v344_v31  ;;  %v353_v37 = vadd.f32 %v341_v1, %v313_v53  ;;  %v381_v39 = vadd.f32 %v377_v30, %v357_v27  ;;  %407 = vadd.xlane.f32.xlu0 %v406_v36  ;;  %v362_v46 = vadd.f32 %v302_v21, %v726_v35 }
  0x3e   : > { %v354_v40 = vadd.f32 %v350_v5, %v314_v61  ;;  %v382_v41 = vadd.f32 %v378_v32, %v358_v22  ;;  %420 = vadd.xlane.f32.xlu1 %v419_v8  ;;  %v393_v47 = vadd.f32 %v389_v42, %v361_v45  ;;  %v431_v62 = vadd.f32 %v360_v18, %v359_v34 }
  0x3f   : > { %v369_v44 = vadd.f32 %v365_v33, %v353_v37  ;;  %385 = vst [vmem:[#allocation3 + $0x8] sm:$0x7] %v381_v39  ;;  %v394_v48 = vadd.f32 %v390_v43, %v362_v46 }
  0x40   : > { %v370_v25 = vadd.f32 %v366_v38, %v354_v40  ;;  %386 = vst [vmem:[#allocation3 + $0x10] sm:$0x7] %v382_v41  ;;  %397 = vst [vmem:[#allocation4 + $0x10] sm:$0x7] %v393_v47 }
  0x41   : > { %373 = vst [vmem:[#allocation2 + $0x18] sm:$0x7] %v369_v44  ;;  %398 = vst [vmem:[#allocation4 + $0x18] sm:$0x7] %v394_v48 }
  0x42   : > { %374 = vst [vmem:[#allocation2 + $0x8] sm:$0x7] %v370_v25 }
  0x46   : > { %v417_v49 = vld [vmem:[#allocation3 + $0x8] sm:$0x7] }
  0x47   : > { %v418_v50 = vld [vmem:[#allocation3 + $0x10] sm:$0x7]  ;;  %v422_v51 = vsel %vm409_vm8, %v417_v49, 0.0 }
  0x48   : > { %v404_v52 = vld [vmem:[#allocation2 + $0x18] sm:$0x7]  ;;  %v423_v53 = vsel %vm409_vm8, %v418_v50, 0.0  ;;  %v429_v56 = vld [vmem:[#allocation4 + $0x10] sm:$0x7] }
  0x49   : > { %v405_v54 = vld [vmem:[#allocation2 + $0x8] sm:$0x7]  ;;  %v410_v55 = vsel %vm409_vm8, %v404_v52, 0.0  ;;  %v424_v29 = vadd.f32 %v423_v53, %v422_v51  ;;  %v430_v57 = vld [vmem:[#allocation4 + $0x18] sm:$0x7]  ;;  %v434_v59 = vsel %vm409_vm8, %v429_v56, 0.0 }
  0x4a   : > { %v411_v35 = vsel %vm409_vm8, %v405_v54, 0.0  ;;  %v435_v60 = vsel %vm409_vm8, %v430_v57, 0.0 }
  0x4b   : > { %v412_v58 = vadd.f32 %v411_v35, %v410_v55  ;;  %425 = vadd.xlane.f32.xlu1 %v424_v29  ;;  %v436_v61 = vadd.f32 %v435_v60, %v434_v59 }
  0x4d   : > { %413 = vadd.xlane.f32.xlu0 %v412_v58 }
  0x4f   : > { %437 = vadd.xlane.f32.xlu1 %v436_v61 }
  0x51   : > { %432 = vadd.xlane.f32.xlu0 %v431_v62 }
  0xc6   : > { %v408_v0 = vpop.xlane.xlu0 %407 }
  0xc7   : > { %v421_v63 = vpop.xlane.xlu1 %420 }
  0xc8   : > { %v440_v10 = vsel %vm439_vm10, %v408_v0, %v421_v63 }
  0xd4   : > { %v426_v3 = vpop.xlane.xlu1 %425 }
  0xd6   : > { %v414_v4 = vpop.xlane.xlu0 %413 }
  0xd7   : > { %v441_v6 = vsel %vm439_vm10, %v414_v4, %v426_v3 }
  0xd8   : > { %v438_v7 = vpop.xlane.xlu1 %437 }
  0xd9   : > { %v444_v9 = vsel %vm442_vm9, %v441_v6, %v438_v7 }
  0xda   : > { %v433_v11 = vpop.xlane.xlu0 %432  ;;  %448 = vst.msk [vmem:[%s238_s23 + $0x8] sm:$0x7] %vm447_vm11, %v444_v9 }
  0xdb   : > { %v443_v12 = vsel %vm442_vm9, %v440_v10, %v433_v11 }
  0xdc   : > { %446 = vst.msk [vmem:[%s238_s23] sm:$0xff] %vm445_vm12, %v443_v12 }
  0xdd PF: > { %s12_s11 = sadd.s32 1, %s646_s11   ;;  %s811_s9 = smov %s642_s10 }
  0xde   : > { %p9_p5 = scmp.ge.s32.totalorder %s12_s11, 4   ;;  %s812_s10 = smov %s814_s12 }
  0xe0   :  { %11 = sbr.rel (!%p9_p5) target bundleno = 2 (0x2), region = 69 }

</bundles_post_ra>
